<compile_context>
chip_gen: v5e
topology: v5e:2x2
jax: 0.10.0
libtpu: 0.0.40
codegen_flags: <defaults>
</compile_context>

<pallas_src>
import jax
import jax.numpy as jnp
from jax.experimental import pallas as pl
from jax.experimental.pallas import tpu as pltpu


def _round_up(x, m):
    return ((x + m - 1) // m) * m


def _cdiv(a, b):
    return -(-a // b)


def _pick_tile(dim, target, align):
    """(tile, padded_dim): tile % align == 0, padded_dim % tile == 0, tile <= ~target."""
    padded = _round_up(dim, align)
    if padded <= target:
        return padded, padded
    ntiles = _cdiv(padded, target)
    tile = _round_up(_cdiv(padded, ntiles), align)
    return tile, _round_up(padded, tile)


def _vmem_capacity_bytes():
    try:
        cap = getattr(pltpu.get_tpu_info(), "vmem_capacity_bytes", None)
        if cap:
            return int(cap)
    except Exception:
        pass
    return 64 * 1024 * 1024  # conservative fallback: v7x per-TensorCore VMEM


def _tile_cost_bytes(tm, tk, tn):
    """Worst-case VMEM footprint: double-buffered bf16 inputs, f32 out + accumulator."""
    return (2 * tm * tk * 2      # adjacency tiles (bf16)
            + 2 * tk * tn * 2    # feature tiles (bf16)
            + 2 * tm * tn * 4    # output tiles (f32)
            + tm * tn * 4)       # f32 accumulator scratch


def _plan_tiles(M, K, F, budget):
    """Choose (tm, tk, tn) tiles and padded (Mp, Kp, Fp) dims for out = adj @ X."""
    m_align = 128 if M >= 128 else 16   # bf16 sublane packing is 16 rows
    Mp = _round_up(M, m_align)
    Kp = _round_up(K, 128)
    Fp = _round_up(F, 128)

    # ---- Fast path: X fully VMEM-resident (tk = Kp, tn = Fp). ----
    # Both HBM streams (O(N^2) adjacency and X) are then read exactly once.
    if _tile_cost_bytes(min(Mp, 256), Kp, Fp) <= budget:
        tk, tn = Kp, Fp
        cap = min(Mp, 1024)
        tm_target = min(Mp, m_align)
        while tm_target < cap:
            nxt = min(tm_target * 2, cap)
            if _tile_cost_bytes(nxt, tk, tn) > budget:
                break
            tm_target = nxt
        # Give the "parallel" i axis >= 2 tiles (v7x megacore) when M is big
        # enough and splitting adds no extra padding.
        if tm_target >= Mp and Mp >= 512 and Mp % (2 * m_align) == 0:
            tm_target = Mp // 2
        tm, Mp = _pick_tile(M, tm_target, m_align)
        return (tm, tk, tn), (Mp, Kp, Fp)

    # ---- General path: tile all three dims with large targets. ----
    tm, Mp = _pick_tile(M, 1024, m_align)
    tk, Kp = _pick_tile(K, 2048, 128)
    tn, Fp = _pick_tile(F, 2048 if budget >= (56 << 20) else 1024, 128)
    # Shrink to the budget: tk first (doesn't change HBM traffic), then tm, then tn.
    while _tile_cost_bytes(tm, tk, tn) > budget:
        if tk >= 2 * 128 and tk >= tm:
            tk, Kp = _pick_tile(K, tk // 2, 128)
        elif tm >= 2 * m_align:
            tm, Mp = _pick_tile(M, tm // 2, m_align)
        elif tn >= 2 * 128:
            tn, Fp = _pick_tile(F, tn // 2, 128)
        else:
            break
    return (tm, tk, tn), (Mp, Kp, Fp)


def _pad_cast_2d(a, shape, dtype):
    """Cast + zero-pad fused into one pass; no-op when nothing to do."""
    if a.shape == shape:
        return a if a.dtype == dtype else a.astype(dtype)
    out = jnp.zeros(shape, dtype)
    return jax.lax.dynamic_update_slice(out, a.astype(dtype), (0, 0))


def _sum_agg_kernel(adj_ref, x_ref, o_ref, acc_ref):
    """One (i, j, k) grid step of out = adj @ X.

    adj_ref: (tm, tk) bf16 adjacency tile
    x_ref:   (tk, tn) bf16 feature tile
    o_ref:   (tm, tn) output tile
    acc_ref: (tm, tn) f32 VMEM accumulator, resident across the k axis
    """
    @pl.when(pl.program_id(2) == 0)
    def _():
        acc_ref[...] = jnp.zeros_like(acc_ref)

    # bf16 x bf16 on the MXU, f32 accumulate (no in-kernel upcast of either tile).
    acc_ref[...] += jnp.dot(adj_ref[...], x_ref[...],
                            preferred_element_type=jnp.float32)

    @pl.when(pl.program_id(2) == pl.num_programs(2) - 1)
    def _():
        o_ref[...] = acc_ref[...].astype(o_ref.dtype)


@jax.jit
def sum_aggregation(X, adj):
    """Pallas implementation of SumAggregation.forward: returns adj @ X.

    X:   (num_nodes, in_features)
    adj: (num_nodes, num_nodes) 0/1 neighborhood indicator.

    Note: both operands are fed to the MXU in bf16 with f32 accumulation. A 0/1
    adjacency is exact in bf16; a weighted adjacency and the features see ~2^-8
    relative truncation (results match a bf16-feature f32 reference tightly).
    """
    M, K = adj.shape
    K2, F = X.shape
    assert K == K2, "adjacency / feature shape mismatch"

    out_dtype = jnp.result_type(adj.dtype, X.dtype)
    if not jnp.issubdtype(out_dtype, jnp.floating):
        out_dtype = jnp.float32  # MXU has no integer path on v7x

    vmem_cap = _vmem_capacity_bytes()
    budget = min(int(vmem_cap * 0.55), 96 * 1024 * 1024)
    (tm, tk, tn), (Mp, Kp, Fp) = _plan_tiles(M, K, F, budget)

    adj_p = _pad_cast_2d(adj, (Mp, Kp), jnp.bfloat16)
    x_p = _pad_cast_2d(X, (Kp, Fp), jnp.bfloat16)

    gi, gj, gk = Mp // tm, Fp // tn, Kp // tk
    grid = (gi, gj, gk)

    # HBM-traffic / flop hint for the XLA scheduler around the custom call.
    adj_passes = gj                           # adj tile (i, k) is re-fetched per j
    x_passes = gi if (gj * gk) > 1 else 1     # X fetched once when its index never changes
    cost = pl.CostEstimate(
        flops=2 * Mp * Kp * Fp,
        transcendentals=0,
        bytes_accessed=int(adj_passes * Mp * Kp * 2
                           + x_passes * Kp * Fp * 2
                           + Mp * Fp * jnp.dtype(out_dtype).itemsize),
    )

    out_p = pl.pallas_call(
        _sum_agg_kernel,
        out_shape=jax.ShapeDtypeStruct((Mp, Fp), out_dtype),
        grid_spec=pltpu.PrefetchScalarGridSpec(
            num_scalar_prefetch=0,
            grid=grid,
            in_specs=[
                pl.BlockSpec((tm, tk), lambda i, j, k: (i, k)),
                pl.BlockSpec((tk, tn), lambda i, j, k: (k, j)),
            ],
            out_specs=pl.BlockSpec((tm, tn), lambda i, j, k: (i, j)),
            scratch_shapes=[pltpu.VMEM((tm, tn), jnp.float32)],
        ),
        compiler_params=pltpu.CompilerParams(
            dimension_semantics=("parallel", "parallel", "arbitrary"),
            vmem_limit_bytes=int(min(budget + (16 << 20), int(vmem_cap * 0.85))),
        ),
        cost_estimate=cost,
    )(adj_p, x_p)

    if (Mp, Fp) != (M, F):
        out_p = out_p[:M, :F]
    return out_p


if __name__ == "__main__":
    key = jax.random.PRNGKey(0)
    k_x, k_adj = jax.random.split(key)

    num_nodes = 8
    in_features = 32

    X = jax.random.normal(k_x, (num_nodes, in_features), dtype=jnp.float32)
    # Random symmetric 0/1 adjacency (no self loops), like a small graph.
    a = (jax.random.uniform(k_adj, (num_nodes, num_nodes)) > 0.5).astype(jnp.float32)
    adj = jnp.triu(a, 1)
    adj = adj + adj.T

    out = sum_aggregation(X, adj)
    jax.block_until_ready(out)
    assert out.shape == (num_nodes, in_features)

    # Tight check against the bf16-feature reference (what the kernel computes,
    # up to f32 accumulation order: 0/1 adjacency and bf16*bf16 products are
    # exact in f32).
    ref_bf16 = adj @ X.astype(jnp.bfloat16).astype(jnp.float32)
    assert jnp.allclose(out, ref_bf16, atol=1e-4, rtol=1e-4), "mismatch vs bf16 reference"

    # Loose sanity check against the pure-f32 forward (bf16 feature truncation).
    ref_f32 = adj @ X
    assert jnp.allclose(out, ref_f32, atol=1e-1, rtol=1e-2), "mismatch vs f32 reference"

    print("KERNEL_OK")
</pallas_src>

<mosaic_0001>
module attributes {stable_mosaic.version = 11 : i64} {
  func.func @_sum_agg_kernel(%arg0: i32, %arg1: i32, %arg2: i32, %arg3: memref<16x128xbf16, #tpu.memory_space<vmem>>, %arg4: memref<128x128xbf16, #tpu.memory_space<vmem>>, %arg5: memref<16x128xf32, #tpu.memory_space<vmem>>, %arg6: memref<16x128xf32, #tpu.memory_space<vmem>>) attributes {dimension_semantics = [#tpu.dimension_semantics<parallel>, #tpu.dimension_semantics<parallel>, #tpu.dimension_semantics<arbitrary>], iteration_bounds = array<i64: 1, 1, 1>, scalar_prefetch = 0 : i64, scratch_operands = 1 : i64, tpu.core_type = #tpu.core_type<tc>, window_params = [{transform_indices = @transform_0, window_bounds = array<i64: 16, 128>}, {transform_indices = @transform_1, window_bounds = array<i64: 128, 128>}, {transform_indices = @transform_2, window_bounds = array<i64: 16, 128>}]} {
    %c0_i32 = arith.constant 0 : i32
    %0 = arith.cmpi eq, %arg2, %c0_i32 : i32
    %1 = arith.extui %0 : i1 to i32
    %c0_i32_0 = arith.constant 0 : i32
    %2 = arith.cmpi ne, %1, %c0_i32_0 : i32
    scf.if %2 {
      %cst_10 = arith.constant 0.000000e+00 : f32
      %12 = vector.broadcast %cst_10 : f32 to vector<16x128xf32>
      %c0_11 = arith.constant 0 : index
      %c0_12 = arith.constant 0 : index
      %13 = vector.load %arg6[%c0_11, %c0_12] : memref<16x128xf32, #tpu.memory_space<vmem>>, vector<16x128xf32>
      tpu.vector_store %arg6[%c0_11, %c0_12], %12 {strides = array<i32>} : memref<16x128xf32, #tpu.memory_space<vmem>>, vector<16x128xf32>,
    } else {
    }
    %c0 = arith.constant 0 : index
    %c0_1 = arith.constant 0 : index
    %3 = vector.load %arg6[%c0, %c0_1] : memref<16x128xf32, #tpu.memory_space<vmem>>, vector<16x128xf32>
    %c0_2 = arith.constant 0 : index
    %c0_3 = arith.constant 0 : index
    %4 = vector.load %arg3[%c0_2, %c0_3] : memref<16x128xbf16, #tpu.memory_space<vmem>>, vector<16x128xbf16>
    %c0_4 = arith.constant 0 : index
    %c0_5 = arith.constant 0 : index
    %5 = vector.load %arg4[%c0_4, %c0_5] : memref<128x128xbf16, #tpu.memory_space<vmem>>, vector<128x128xbf16>
    %cst = arith.constant dense<0.000000e+00> : vector<16x128xf32>
    %6 = tpu.matmul %4, %5, %cst {dimension_numbers = #tpu.dot_dimension_numbers<[1], [0], [0], [1], [0, 0, 1, 1], [], []>} : vector<16x128xbf16>, vector<128x128xbf16>, vector<16x128xf32> -> vector<16x128xf32>
    %7 = arith.addf %3, %6 : vector<16x128xf32>
    %c0_6 = arith.constant 0 : index
    %c0_7 = arith.constant 0 : index
    %8 = vector.load %arg6[%c0_6, %c0_7] : memref<16x128xf32, #tpu.memory_space<vmem>>, vector<16x128xf32>
    tpu.vector_store %arg6[%c0_6, %c0_7], %7 {strides = array<i32>} : memref<16x128xf32, #tpu.memory_space<vmem>>, vector<16x128xf32>,
    %c0_i32_8 = arith.constant 0 : i32
    %9 = arith.cmpi eq, %arg2, %c0_i32_8 : i32
    %10 = arith.extui %9 : i1 to i32
    %c0_i32_9 = arith.constant 0 : i32
    %11 = arith.cmpi ne, %10, %c0_i32_9 : i32
    scf.if %11 {
      %c0_10 = arith.constant 0 : index
      %c0_11 = arith.constant 0 : index
      %12 = vector.load %arg6[%c0_10, %c0_11] : memref<16x128xf32, #tpu.memory_space<vmem>>, vector<16x128xf32>
      %c0_12 = arith.constant 0 : index
      %c0_13 = arith.constant 0 : index
      %13 = vector.load %arg5[%c0_12, %c0_13] : memref<16x128xf32, #tpu.memory_space<vmem>>, vector<16x128xf32>
      tpu.vector_store %arg5[%c0_12, %c0_13], %12 {strides = array<i32>} : memref<16x128xf32, #tpu.memory_space<vmem>>, vector<16x128xf32>,
    } else {
    }
    return
  }
  func.func @transform_0(%arg0: i32, %arg1: i32, %arg2: i32) -> (i32, i32) {
    %c0_i32 = arith.constant 0 : i32
    return %arg0, %arg2 : i32, i32
  }
  func.func @transform_1(%arg0: i32, %arg1: i32, %arg2: i32) -> (i32, i32) {
    %c0_i32 = arith.constant 0 : i32
    return %arg2, %arg1 : i32, i32
  }
  func.func @transform_2(%arg0: i32, %arg1: i32, %arg2: i32) -> (i32, i32) {
    %c0_i32 = arith.constant 0 : i32
    return %arg0, %arg1 : i32, i32
  }
}

</mosaic_0001>

<bundles_post_ra>
// kernel: sum_aggregation.1
= control target key start
LH: loop header
LB: loop body
LE: loop exit
PB: predicated region body
PF: predicated region fallthrough
CT: control target
= control target key end

     0   :  { %s213_s1 = inlined_call_operand.vmem [shape: bf16[128,128], index: 1, kind: input, shape index: {}]   ;;  %s214_s0 = inlined_call_operand.vmem [shape: bf16[16,128], index: 0, kind: input, shape index: {}]   ;;  %s215_s2 = inlined_call_operand.vmem [shape: f32[16,128], index: 2, kind: output, shape index: {}]  }
   0x1   :  { %v164_v0 = vld [vmem:[%s213_s1 + $0x38] sm:$0xff]  ;;  %v163_v1 = vld [vmem:[%s213_s1 + $0x30] sm:$0xff]  ;;  %v162_v2 = vld [vmem:[%s213_s1 + $0x28] sm:$0xff] }
   0x2   :  { %91 = vmatpush.bf16.msra.mxu0 %v164_v0  ;;  %v161_v3 = vld [vmem:[%s213_s1 + $0x20] sm:$0xff]  ;;  %v160_v4 = vld [vmem:[%s213_s1 + $0x18] sm:$0xff]  ;;  %v159_v5 = vld [vmem:[%s213_s1 + $0x10] sm:$0xff] }
   0x3   :  { %v158_v6 = vld [vmem:[%s213_s1 + $0x8] sm:$0xff]  ;;  %v157_v7 = vld [vmem:[%s213_s1] sm:$0xff] }
   0x4   :  { %v156_v8 = vld [vmem:[%s214_s0] sm:$0xff] }
   0x6   :  { %92 = vmatpush.bf16.msra.mxu0 %v163_v1 }
   0xa   :  { %93 = vmatpush.bf16.msra.mxu0 %v162_v2 }
   0xe   :  { %94 = vmatpush.bf16.msra.mxu0 %v161_v3 }
  0x12   :  { %95 = vmatpush.bf16.msra.mxu0 %v160_v4 }
  0x16   :  { %96 = vmatpush.bf16.msra.mxu0 %v159_v5 }
  0x1a   :  { %97 = vmatpush.bf16.msra.mxu0 %v158_v6 }
  0x1e   :  { %98 = vmatpush.bf16.msra.mxu0 %v157_v7 }
  0x21   :  { %99 = vmatmul.bf16.vlgmr.msra.gmra.mxu0 %v156_v8 }
  0x9e   :  { %v100_v9 = vpop.f32.mrf.mxu0 }
  0x9f   :  { %114 = vst [vmem:[%s215_s2] sm:$0xff] %v100_v9 }
  0xa6   :  { %v102_v10 = vpop.f32.mrf.mxu0 }
  0xa7   :  { %115 = vst [vmem:[%s215_s2 + $0x8] sm:$0xff] %v102_v10 }

</bundles_post_ra>
